<compile_context>
chip_gen: v5e
topology: v5e:2x2
jax: 0.10.0
libtpu: 0.0.40
codegen_flags: <defaults>
</compile_context>

<pallas_src>
import numpy as np
import jax
import jax.numpy as jnp
from jax.experimental import pallas as pl
from jax.experimental.pallas import tpu as pltpu


def make_positional_encoding_weight(d_model: int, max_seq_len: int = 20) -> jnp.ndarray:
    """Deterministic parameter init identical to the PyTorch __init__."""
    pe = np.array(
        [[pos / np.power(10000, 2.0 * (j // 2) / d_model) for j in range(d_model)]
         for pos in range(max_seq_len)]
    )
    pe[:, 0::2] = np.sin(pe[:, 0::2])
    pe[:, 1::2] = np.cos(pe[:, 1::2])
    pad_row = np.zeros((1, d_model), dtype=np.float64)
    weight = np.concatenate([pad_row, pe], axis=0).astype(np.float32)  # (max_seq_len+1, d_model)
    return jnp.asarray(weight)


def positional_encoding_rows(weight: jnp.ndarray, start, seq_len: int, *, tile_rows: int = 512):
    """DMA-gather rows [start+1, start+seq_len] of the table -> (seq_len, d_model)."""
    max_rows, d_model = weight.shape
    assert 1 <= seq_len <= max_rows - 1, "seq_len exceeds the positional table"

    # Tile over seq_len.  A single full-extent block for short sequences;
    # otherwise 8-aligned tiles sized to stay well under scoped VMEM
    # (2 buffers x tile_rows x d_model x 4B) on v5e/v6e/v7x.
    if seq_len <= tile_rows:
        T = seq_len
    else:
        T = tile_rows
        assert T % 8 == 0, "tile_rows must be a multiple of 8"
    num_tiles = pl.cdiv(seq_len, T)
    rem = seq_len % T

    def kernel(start_ref, w_hbm, o_ref, sem):
        i = pl.program_id(0)
        row0 = start_ref[0] + 1 + i * T

        def copy_rows(nrows):
            cp = pltpu.make_async_copy(
                w_hbm.at[pl.ds(row0, nrows), :],     # contiguous HBM rows
                o_ref.at[pl.ds(0, nrows), :],        # pipelined VMEM output block
                sem,
            )
            cp.start()
            cp.wait()

        if rem == 0:
            copy_rows(T)
        else:
            @pl.when(i < num_tiles - 1)
            def _():
                copy_rows(T)

            @pl.when(i == num_tiles - 1)
            def _():
                copy_rows(rem)   # partial tail; OOB rows of the block are masked on writeback

    # Clamp start so start+1+seq_len never exceeds the table (PyTorch would raise;
    # here we guarantee no OOB DMA).
    start_arr = jnp.clip(
        jnp.asarray(start, jnp.int32), 0, max_rows - 1 - seq_len
    ).reshape((1,))

    grid_spec = pltpu.PrefetchScalarGridSpec(
        num_scalar_prefetch=1,
        grid=(num_tiles,),
        in_specs=[
            # Embedding table stays in HBM; gather happens via explicit DMA.
            pl.BlockSpec(memory_space=pl.ANY),
        ],
        out_specs=pl.BlockSpec((T, d_model), lambda i, s: (i, 0)),
        scratch_shapes=[pltpu.SemaphoreType.DMA(())],
    )

    return pl.pallas_call(
        kernel,
        out_shape=jax.ShapeDtypeStruct((seq_len, d_model), weight.dtype),
        grid_spec=grid_spec,
        compiler_params=pltpu.CompilerParams(
            dimension_semantics=("parallel",),   # tiles are independent; v7x 2-TC sharding
        ),
    )(start_arr, weight)


def positional_encoding_forward(weight: jnp.ndarray, batch_len: int, start, seq_len: int,
                                *, tile_rows: int = 512):
    """Pallas equivalent of PositionalEncoding.forward(batch_len, start, seq_len).

    Returns [seq_len, batch_len, d_model] (matching the PyTorch `.transpose(0, 1)`).
    The batch broadcast is done lazily here rather than materialized in the kernel.
    """
    rows = positional_encoding_rows(weight, start, seq_len, tile_rows=tile_rows)
    seq, d_model = rows.shape
    return jnp.broadcast_to(rows[:, None, :], (seq, batch_len, d_model))


if __name__ == "__main__":
    d_model = 32
    max_seq_len = 20
    batch_len = 2

    _ = jax.random.PRNGKey(0)  # determinism convention; forward inputs are scalars

    weight = make_positional_encoding_weight(d_model, max_seq_len)
    w_np = np.asarray(weight)

    # Case 1: small single-tile path (seq_len=8, start=3).
    start, seq_len = 3, 8
    out = jax.block_until_ready(
        positional_encoding_forward(weight, batch_len, start, seq_len))
    pos = np.arange(start + 1, start + seq_len + 1)
    ref = np.broadcast_to(w_np[pos][:, None, :], (seq_len, batch_len, d_model))
    assert out.shape == (seq_len, batch_len, d_model), out.shape
    np.testing.assert_allclose(np.asarray(out), ref, rtol=1e-6, atol=1e-6)

    # Case 2: multi-tile path with a partial last tile (exercises seq_len tiling).
    start2, seq_len2 = 0, 20
    out2 = jax.block_until_ready(
        positional_encoding_forward(weight, batch_len, start2, seq_len2, tile_rows=8))
    pos2 = np.arange(start2 + 1, start2 + seq_len2 + 1)
    ref2 = np.broadcast_to(w_np[pos2][:, None, :], (seq_len2, batch_len, d_model))
    np.testing.assert_allclose(np.asarray(out2), ref2, rtol=1e-6, atol=1e-6)

    print("KERNEL_OK")
</pallas_src>

<mosaic_0001>
module attributes {stable_mosaic.version = 11 : i64} {
  func.func @kernel(%arg0: i32, %arg1: memref<1xi32, #tpu.memory_space<smem>>, %arg2: memref<21x32xf32, #tpu.memory_space<any>>, %arg3: memref<8x32xf32, #tpu.memory_space<vmem>>, %arg4: memref<!tpu.dma_semaphore, #tpu.memory_space<semaphore_mem>>) attributes {dimension_semantics = [#tpu.dimension_semantics<parallel>], iteration_bounds = array<i64: 1>, scalar_prefetch = 1 : i64, scratch_operands = 1 : i64, tpu.core_type = #tpu.core_type<tc>, window_params = [{}, {transform_indices = @transform_1, window_bounds = array<i64: 8, 32>}]} {
    %c0 = arith.constant 0 : index
    %0 = memref.load %arg1[%c0] : memref<1xi32, #tpu.memory_space<smem>>
    %c1_i32 = arith.constant 1 : i32
    %1 = arith.addi %0, %c1_i32 : i32
    %c8_i32 = arith.constant 8 : i32
    %2 = arith.muli %arg0, %c8_i32 : i32
    %3 = arith.addi %1, %2 : i32
    %c0_i32 = arith.constant 0 : i32
    %4 = tpu.memref_slice %arg2[%3, %c0_i32] : memref<21x32xf32, #tpu.memory_space<any>> -> memref<8x32xf32, #tpu.memory_space<any>>
    %c0_i32_0 = arith.constant 0 : i32
    %c0_i32_1 = arith.constant 0 : i32
    %5 = tpu.memref_slice %arg3[%c0_i32_0, %c0_i32_1] : memref<8x32xf32, #tpu.memory_space<vmem>> -> memref<8x32xf32, #tpu.memory_space<vmem>>
    tpu.enqueue_dma source(%4 : memref<8x32xf32, #tpu.memory_space<any>>) target(%5 : memref<8x32xf32, #tpu.memory_space<vmem>>) target_semaphore(%arg4 : memref<!tpu.dma_semaphore, #tpu.memory_space<semaphore_mem>>)
    %c0_i32_2 = arith.constant 0 : i32
    %6 = tpu.memref_slice %arg2[%3, %c0_i32_2] : memref<21x32xf32, #tpu.memory_space<any>> -> memref<8x32xf32, #tpu.memory_space<any>>
    %c0_i32_3 = arith.constant 0 : i32
    %c0_i32_4 = arith.constant 0 : i32
    %7 = tpu.memref_slice %arg3[%c0_i32_3, %c0_i32_4] : memref<8x32xf32, #tpu.memory_space<vmem>> -> memref<8x32xf32, #tpu.memory_space<vmem>>
    tpu.wait_dma2 semaphore(%arg4 : memref<!tpu.dma_semaphore, #tpu.memory_space<semaphore_mem>>) src(%6 : memref<8x32xf32, #tpu.memory_space<any>>) dst(%7 : memref<8x32xf32, #tpu.memory_space<vmem>>)
    return
  }
  func.func @transform_1(%arg0: i32, %arg1: memref<1xi32, #tpu.memory_space<smem>>) -> (i32, i32) {
    %c0_i32 = arith.constant 0 : i32
    %c0_i32_0 = arith.constant 0 : i32
    return %arg0, %c0_i32 : i32, i32
  }
}

</mosaic_0001>

<bundles_post_ra>
// kernel: tpu_custom_call.1
= control target key start
LH: loop header
LB: loop body
LE: loop exit
PB: predicated region body
PF: predicated region fallthrough
CT: control target
= control target key end

     0   :  { %8 = vsyncpa [#allocation6], 0  ;;  %s108_s15 = smov [#allocation5]   ;;  %s139_s0 = inlined_call_operand.<no memory space> [shape: s32[1], index: 0, kind: input, shape index: {}]   ;;  %s140_s1 = inlined_call_operand.hbm [shape: f32[21,32], index: 1, kind: input, shape index: {}]   ;;  %s141_s2 = inlined_call_operand.hbm [shape: f32[8,32], index: 2, kind: output, shape index: {}]  }
   0x1   :  { %s52_s13 = scalar_lea.hbm %s140_s1, %s139_s0  ;;  %s23_s16 = sshll.u32 %s108_s15, 4  ;;  %s24_s16 = int_to_ptr.vmem [resolvable:$true] %s23_s16 }
   0x2   :  { %s53_s14 = scalar_lea.hbm %s52_s13, 1  ;;  %s60_s22 = scalar_lea.hbm %s140_s1, 24 }
   0x3   :  { %s21_s17 = sshll.u32 %s53_s14, 4  ;;  %s22_s17 = int_to_ptr.hbm [resolvable:$true] %s21_s17 }
   0x4   :  { %s56_s18 = sshra.s32 %s22_s17, 4  ;;  %s57_s18 = int_to_ptr.hbm [resolvable:$true] %s56_s18 }
   0x5   :  { %s58_s19 = scalar_lea.hbm %s57_s18, 8  ;;  %p61_p1 = scmp.lt.s32.totalorder %s57_s18, %s140_s1 }
   0x6   :  { %p59_p0 = scmp.ne.s32.totalorder %s57_s18, %s58_s19  ;;  %p62_p2 = scmp.lt.s32.totalorder %s60_s22, %s58_s19 }
   0x8   :  { %p63_p3 = por %p62_p2, %p61_p1 }
   0xa   :  { %p64_p4 = pnand %p63_p3, %p59_p0 }
   0xc   :  { %67 = shalt.err (!%p64_p4)  }
   0xd   :  { %26 = dma.hbm_to_vmem [thread:$0]  %s22_s17, 128, %s24_s16, [#allocation2] }
   0xe   :  { %104 = dma.done.wait [#allocation2], 128 }
   0xf   :  { %105 = vsyncadd [#allocation2], 4294967168  ;;  %s37_s26 = sshll.u32 %s141_s2, 4  ;;  %s38_s26 = int_to_ptr.hbm [resolvable:$true] %s37_s26 }
  0x10   :  { %40 = dma.vmem_to_hbm [thread:$0]  %s24_s16, 128, %s38_s26, [#allocation6]  }
  0x11   :  { %106 = dma.done.wait [#allocation6], 128  }
  0x12   :  { %107 = vsyncadd [#allocation6], 4294967168 }
  0x13   :  { %45 = vsyncpa [#allocation6], 1 }
  0x14   :  { %46 = vsyncmov [#allocation2] }
  0x17   :  { %s47_s27 = vpop.sfrf %46 }
  0x18   :  { %p54_p5 = scmp.ne.s32.totalorder %s47_s27, 0 }
  0x1a   :  { %51 = shalt.err (%p54_p5)  }

</bundles_post_ra>
